<compile_context>
chip_gen: v7x
topology: tpu7x:2x2x1
jax: 0.10.0
libtpu: 0.0.40
codegen_flags: <defaults>
</compile_context>

<pallas_src>
import jax
import jax.numpy as jnp
from jax.experimental import pallas as pl
from jax.experimental.pallas import tpu as pltpu

LANE = 128
MAX_TILE_ROWS = 1024  # 1024*128*4B = 512 KiB per tile per input


def _cmae_kernel(t_ref, p_ref, out_ref):
    # t_ref / p_ref: (tile_rows, 128) f32 tiles
    d = t_ref[...] - p_ref[...]
    frac = d - jnp.floor(d)
    val = jnp.minimum(frac, 1.0 - frac)        # == |wrapped_diff| / (2*pi)
    # Reduce (tile_rows, 128) -> (8, 128) partial sum (pure VPU adds);
    # the cross-lane reduction is deferred to the wrapper epilogue.
    out_ref[0] = val.reshape(-1, 8, LANE).sum(axis=0)


def circular_mean_absolute_error(y_true, y_pred):
    assert y_true.shape == y_pred.shape
    n = int(y_true.size)

    t = y_true.reshape(-1).astype(jnp.float32)
    p = y_pred.reshape(-1).astype(jnp.float32)

    rows = pl.cdiv(n, LANE)
    tile_rows = min(MAX_TILE_ROWS, ((rows + 7) // 8) * 8)  # multiple of 8
    rows_padded = pl.cdiv(rows, tile_rows) * tile_rows
    n_padded = rows_padded * LANE
    if n_padded != n:
        # Tail-only pad (no full zeros+scatter); pad region has t == p == 0
        # so frac == 0 and min(0, 1) == 0 -> contributes nothing to the sum.
        t = jnp.pad(t, (0, n_padded - n))
        p = jnp.pad(p, (0, n_padded - n))

    t2d = t.reshape(rows_padded, LANE)
    p2d = p.reshape(rows_padded, LANE)

    num_blocks = rows_padded // tile_rows

    partials = pl.pallas_call(
        _cmae_kernel,
        out_shape=jax.ShapeDtypeStruct((num_blocks, 8, LANE), jnp.float32),
        grid_spec=pltpu.PrefetchScalarGridSpec(
            num_scalar_prefetch=0,
            grid=(num_blocks,),
            in_specs=[
                pl.BlockSpec((tile_rows, LANE), lambda i: (i, 0)),
                pl.BlockSpec((tile_rows, LANE), lambda i: (i, 0)),
            ],
            out_specs=pl.BlockSpec((1, 8, LANE), lambda i: (i, 0, 0)),
        ),
        compiler_params=pltpu.CompilerParams(
            dimension_semantics=("parallel",)),
    )(t2d, p2d)

    # Tiny epilogue outside the kernel: cross-lane sum + divide by true N.
    # PyTorch torch.mean returns a 0-d scalar tensor; this is a 0-d array.
    return jnp.sum(partials) / jnp.float32(n)


def _reference(y_true, y_pred):
    # Literal translation of the PyTorch module (sin/cos/atan2 path).
    t = y_true.astype(jnp.float32) * (2.0 * jnp.pi)
    p = y_pred.astype(jnp.float32) * (2.0 * jnp.pi)
    d = jnp.arctan2(jnp.sin(t - p), jnp.cos(t - p))
    return jnp.mean(jnp.abs(jnp.degrees(d)) / 360.0)


if __name__ == "__main__":
    key = jax.random.PRNGKey(0)
    k1, k2, k3, k4 = jax.random.split(key, 4)

    # Small NCHW-shaped inputs (normalized angle maps in [0, 1)).
    y_true = jax.random.uniform(k1, (2, 4, 16, 16), dtype=jnp.float32)
    y_pred = jax.random.uniform(k2, (2, 4, 16, 16), dtype=jnp.float32)

    result = circular_mean_absolute_error(y_true, y_pred)
    jax.block_until_ready(result)
    ref = _reference(y_true, y_pred)
    assert jnp.allclose(result, ref, atol=1e-5, rtol=1e-5), (result, ref)

    # Non-lane-aligned size to exercise the tail-padding path.
    y_true2 = jax.random.uniform(k3, (3, 5, 7, 11), dtype=jnp.float32)
    y_pred2 = jax.random.uniform(k4, (3, 5, 7, 11), dtype=jnp.float32)
    result2 = circular_mean_absolute_error(y_true2, y_pred2)
    jax.block_until_ready(result2)
    ref2 = _reference(y_true2, y_pred2)
    assert jnp.allclose(result2, ref2, atol=1e-5, rtol=1e-5), (result2, ref2)

    print("KERNEL_OK")
</pallas_src>

<mosaic_0001>
module attributes {stable_mosaic.version = 11 : i64} {
  func.func @_cmae_kernel(%arg0: i32, %arg1: memref<16x128xf32, #tpu.memory_space<vmem>>, %arg2: memref<16x128xf32, #tpu.memory_space<vmem>>, %arg3: memref<1x8x128xf32, #tpu.memory_space<vmem>>) attributes {dimension_semantics = [#tpu.dimension_semantics<parallel>], iteration_bounds = array<i64: 1>, scalar_prefetch = 0 : i64, scratch_operands = 0 : i64, tpu.core_type = #tpu.core_type<tc>, window_params = [{transform_indices = @transform_0, window_bounds = array<i64: 16, 128>}, {transform_indices = @transform_1, window_bounds = array<i64: 16, 128>}, {transform_indices = @transform_2, window_bounds = array<i64: 1, 8, 128>}]} {
    %c0 = arith.constant 0 : index
    %c0_0 = arith.constant 0 : index
    %0 = vector.load %arg1[%c0, %c0_0] : memref<16x128xf32, #tpu.memory_space<vmem>>, vector<16x128xf32>
    %c0_1 = arith.constant 0 : index
    %c0_2 = arith.constant 0 : index
    %1 = vector.load %arg2[%c0_1, %c0_2] : memref<16x128xf32, #tpu.memory_space<vmem>>, vector<16x128xf32>
    %2 = arith.subf %0, %1 : vector<16x128xf32>
    %3 = math.floor %2 : vector<16x128xf32>
    %4 = arith.subf %2, %3 : vector<16x128xf32>
    %cst = arith.constant 1.000000e+00 : f32
    %5 = vector.broadcast %cst : f32 to vector<16x128xf32>
    %6 = arith.subf %5, %4 : vector<16x128xf32>
    %7 = arith.minimumf %4, %6 : vector<16x128xf32>
    %8 = vector.shape_cast %7 : vector<16x128xf32> to vector<2x8x128xf32>
    %cst_3 = arith.constant dense<0.000000e+00> : vector<8x128xf32>
    %9 = vector.multi_reduction <add>, %8, %cst_3 [0] : vector<2x8x128xf32> to vector<8x128xf32>
    %c0_4 = arith.constant 0 : index
    %c0_5 = arith.constant 0 : index
    %c0_6 = arith.constant 0 : index
    %10 = vector.load %arg3[%c0_4, %c0_5, %c0_6] : memref<1x8x128xf32, #tpu.memory_space<vmem>>, vector<1x8x128xf32>
    %11 = vector.shape_cast %10 : vector<1x8x128xf32> to vector<8x128xf32>
    %12 = vector.shape_cast %9 : vector<8x128xf32> to vector<1x8x128xf32>
    tpu.vector_store %arg3[%c0_4, %c0_5, %c0_6], %12 {strides = array<i32>} : memref<1x8x128xf32, #tpu.memory_space<vmem>>, vector<1x8x128xf32>,
    return
  }
  func.func @transform_0(%arg0: i32) -> (i32, i32) {
    %c0_i32 = arith.constant 0 : i32
    %c0_i32_0 = arith.constant 0 : i32
    return %arg0, %c0_i32 : i32, i32
  }
  func.func @transform_1(%arg0: i32) -> (i32, i32) {
    %c0_i32 = arith.constant 0 : i32
    %c0_i32_0 = arith.constant 0 : i32
    return %arg0, %c0_i32 : i32, i32
  }
  func.func @transform_2(%arg0: i32) -> (i32, i32, i32) {
    %c0_i32 = arith.constant 0 : i32
    %c0_i32_0 = arith.constant 0 : i32
    %c0_i32_1 = arith.constant 0 : i32
    return %arg0, %c0_i32, %c0_i32_0 : i32, i32, i32
  }
}

</mosaic_0001>

<bundles_post_ra>
// kernel: tpu_custom_call.1
= control target key start
LH: loop header
LB: loop body
LE: loop exit
PB: predicated region body
PF: predicated region fallthrough
CT: control target
= control target key end

     0   :  { %7 = vsyncpa [#allocation3], 0  ;;  %s205_s0 = inlined_call_operand.hbm [shape: f32[16,128], index: 0, kind: input, shape index: {}]   ;;  %s206_s1 = inlined_call_operand.hbm [shape: f32[16,128], index: 1, kind: input, shape index: {}]   ;;  %s207_s2 = inlined_call_operand.hbm [shape: f32[1,8,128], index: 2, kind: output, shape index: {}]  }
   0x1   :  { %8 = vsyncpa [#allocation6], 0 }
   0x2   :  { %9 = vsyncpa [#allocation4], 0  ;;  %s149_s9 = smov [#allocation2]   ;;  %s77_s13 = scalar_lea.hbm %s205_s0, 256 }
   0x3   :  { %s15_s10 = sshll.u32 %s149_s9, 4  ;;  %p78_p0 = scmp.ne.s32.totalorder %s205_s0, %s77_s13  ;;  %s16_s10 = int_to_ptr.vmem [resolvable:$true] %s15_s10 }
   0x4   :  { %p81_p1 = scmp.lt.u32.totalorder %s77_s13, %s205_s0 }
   0x6   :  { %p83_p2 = pnand %p81_p1, %p78_p0 }
   0x8   :  { %86 = shalt.err (!%p83_p2)
}
   0x9   :  { %s87_s18 = scalar_lea.vmem %s16_s10, 256  ;;  %p92_p4 = scmp.lt.s32.totalorder %s16_s10, %s16_s10 }
   0xa   :  { %p88_p3 = scmp.ne.s32.totalorder %s16_s10, %s87_s18  ;;  %p93_p5 = scmp.lt.s32.totalorder %s87_s18, %s87_s18 }
   0xc   :  { %p94_p6 = por %p93_p5, %p92_p4 }
   0xe   :  { %p95_p7 = pnand %p94_p6, %p88_p3 }
  0x10   :  { %98 = shalt.err (!%p95_p7)
}
  0x11   :  { %s150_s19 = smov 128   ;;  %s151_s20 = smov 8  }
  0x12   :  { %21 = dma.hbm_to_vmem [thread:$0]  %s205_s0, 256, %s16_s10, [#allocation3], %s150_s19, %s150_s19, %s151_s20  }
  0x13   :  { %s152_s23 = smov [#allocation5]   ;;  %s99_s27 = scalar_lea.hbm %s206_s1, 256 }
  0x14   :  { %s27_s24 = sshll.u32 %s152_s23, 4  ;;  %p100_p8 = scmp.ne.s32.totalorder %s206_s1, %s99_s27  ;;  %s28_s24 = int_to_ptr.vmem [resolvable:$true] %s27_s24 }
  0x15   :  { %p103_p9 = scmp.lt.u32.totalorder %s99_s27, %s206_s1 }
  0x17   :  { %p105_p10 = pnand %p103_p9, %p100_p8 }
  0x19   :  { %108 = shalt.err (!%p105_p10)
}
  0x1a   :  { %s109_s4 = scalar_lea.vmem %s28_s24, 256  ;;  %p114_p12 = scmp.lt.s32.totalorder %s28_s24, %s28_s24 }
  0x1b   :  { %p110_p11 = scmp.ne.s32.totalorder %s28_s24, %s109_s4  ;;  %p115_p13 = scmp.lt.s32.totalorder %s109_s4, %s109_s4 }
  0x1d   :  { %p116_p0 = por %p115_p13, %p114_p12 }
  0x1f   :  { %p117_p1 = pnand %p116_p0, %p110_p11 }
  0x21   :  { %120 = shalt.err (!%p117_p1)
}
  0x22   :  { %33 = dma.hbm_to_vmem [thread:$0]  %s206_s1, 256, %s28_s24, [#allocation6], %s150_s19, %s150_s19, %s151_s20  }
  0x23   :  { %143 = dma.done.wait [#allocation3], 256  }
  0x24   :  { %144 = vsyncadd [#allocation3], 4294967040 }
  0x25   :  { %145 = dma.done.wait [#allocation6], 256  }
  0x26   :  { %146 = vsyncadd [#allocation6], 4294967040  ;;  %v40_v0 = vld [vmem:[#allocation2] sm:$0xff]  ;;  %v41_v1 = vld [vmem:[#allocation2 + $0x8] sm:$0xff]  ;;  %s153_s6 = smov [#allocation7]  }
  0x27   :  { %v42_v2 = vld [vmem:[#allocation5] sm:$0xff]  ;;  %v43_v3 = vld [vmem:[#allocation5 + $0x8] sm:$0xff]  ;;  %s62_s7 = sshll.u32 %s153_s6, 4  ;;  %s63_s7 = int_to_ptr.vmem [resolvable:$true] %s62_s7 }
  0x28   :  { %v44_v4 = vsub.f32 %v40_v0, %v42_v2  ;;  %v45_v5 = vsub.f32 %v41_v1, %v43_v3  ;;  %s121_s1 = scalar_lea.vmem %s63_s7, 128  ;;  %p126_p3 = scmp.lt.s32.totalorder %s63_s7, %s63_s7 }
  0x29   :  { %p122_p2 = scmp.ne.s32.totalorder %s63_s7, %s121_s1  ;;  %p127_p4 = scmp.lt.s32.totalorder %s121_s1, %s121_s1 }
  0x2a   :  { %v46_v6 = vfloor.f32 %v44_v4  ;;  %v47_v7 = vfloor.f32 %v45_v5 }
  0x2b   :  { %p128_p5 = por %p127_p4, %p126_p3 }
  0x2c   :  { %v48_v8 = vsub.f32 %v44_v4, %v46_v6  ;;  %v49_v9 = vsub.f32 %v45_v5, %v47_v7 }
  0x2d   :  { %p129_p6 = pnand %p128_p5, %p122_p2 }
  0x2e   :  { %v50_v10 = vsub.f32 1.0, %v48_v8  ;;  %v51_v11 = vsub.f32 1.0, %v49_v9 }
  0x30   :  { %v52_v12 = vmin.f32 %v48_v8, %v50_v10  ;;  %v53_v13 = vmin.f32 %v49_v9, %v51_v11 }
  0x32   :  { %v54_v14 = vadd.f32 %v53_v13, %v52_v12 }
  0x34   :  { %55 = vst [vmem:[#allocation7] sm:$0xff] %v54_v14 }
  0x35   :  { %132 = shalt.err (!%p129_p6)
}
  0x36   :  { %s133_s10 = scalar_lea.hbm %s207_s2, 128 }
  0x37   :  { %p134_p7 = scmp.ne.s32.totalorder %s207_s2, %s133_s10  ;;  %p137_p8 = scmp.lt.u32.totalorder %s133_s10, %s207_s2 }
  0x39   :  { %p139_p9 = pnand %p137_p8, %p134_p7 }
  0x3b   :  { %142 = shalt.err (!%p139_p9)
}
  0x3c   :  { %65 = dma.vmem_to_hbm [thread:$0]  %s63_s7, 128, %s207_s2, [#allocation4]  }
  0x3d   :  { %147 = dma.done.wait [#allocation4], 128  }
  0x3e   :  { %148 = vsyncadd [#allocation4], 4294967168 }
  0x3f   :  { %69 = vsyncpa [#allocation3], 1 }
  0x40   :  { %70 = vsyncpa [#allocation6], 1 }
  0x41   :  { %71 = vsyncpa [#allocation4], 1 }

</bundles_post_ra>
